<compile_context>
chip_gen: v6e
topology: v6e:2x2x1
jax: 0.10.0
libtpu: 0.0.40
codegen_flags: <defaults>
</compile_context>

<pallas_src>
import functools

import jax
import jax.numpy as jnp
from jax.experimental import pallas as pl
from jax.experimental.pallas import tpu as pltpu


def rainbow_kernel(dims, offs, x_ref, slab_ref, out_ref):
    """dims = (num_inputs, num_nodes, num_actions, num_atoms); offs = slab row offsets."""
    num_inputs, N, A, At = dims
    (o_w1, o_b1, o_w2, o_b2, o_wva1, o_bva1, o_wva2, o_bva2) = offs
    f32 = jnp.float32

    x = x_ref[...]                                                    # (bt, num_inputs)

    # Static, sublane(8)-aligned slices of the packed parameter slab (zero-cost views).
    w1   = slab_ref[o_w1:o_w1 + num_inputs, 0:N]
    b1   = slab_ref[o_b1:o_b1 + 1,          0:N]
    w2   = slab_ref[o_w2:o_w2 + N,          0:N]
    b2   = slab_ref[o_b2:o_b2 + 1,          0:N]
    wva1 = slab_ref[o_wva1:o_wva1 + N,      0:2 * N]
    bva1 = slab_ref[o_bva1:o_bva1 + 1,      0:2 * N]
    wva2 = slab_ref[o_wva2:o_wva2 + 2 * N,  0:At + A * At]
    bva2 = slab_ref[o_bva2:o_bva2 + 1,      0:At + A * At]

    # Trunk: linear1 -> relu -> linear2 -> relu           (2 MXU passes)
    h1 = jnp.maximum(jnp.dot(x,  w1, preferred_element_type=f32) + b1, 0.0)
    h2 = jnp.maximum(jnp.dot(h1, w2, preferred_element_type=f32) + b2, 0.0)

    # Fused value/advantage hidden layer: [v1 | a1]       (1 MXU pass)
    va1 = jnp.maximum(jnp.dot(h2, wva1, preferred_element_type=f32) + bva1, 0.0)

    # Fused block-diagonal heads: [v | adv_flat]          (1 MXU pass)
    va2 = jnp.dot(va1, wva2, preferred_element_type=f32) + bva2      # (bt, At + A*At)

    v   = va2[:, 0:At]                                               # (bt, At)
    adv = va2[:, At:]                                                # (bt, A*At)

    # adv.mean over actions via static lane slices of the fused result.
    adv_mean = adv[:, 0:At]
    for a in range(1, A):
        adv_mean = adv_mean + adv[:, a * At:(a + 1) * At]
    adv_mean = adv_mean * (1.0 / A)

    shift = v - adv_mean                                             # (bt, At)

    # Dueling combine + per-(batch, action) softmax over atoms; single fused store.
    # Exact divide for the normalizer so each row sums to 1 to f32 precision.
    ps = []
    for a in range(A):                                               # A is small, static unroll
        q = adv[:, a * At:(a + 1) * At] + shift
        q = q - jnp.max(q, axis=-1, keepdims=True)
        e = jnp.exp(q)
        p = e / jnp.sum(e, axis=-1, keepdims=True)
        ps.append(p)
    out_ref[...] = jnp.concatenate(ps, axis=-1)                      # one fused store


def rainbow_forward(x, slab, offsets, *, num_inputs, num_nodes, num_actions, num_atoms,
                    batch_tile=256):
    B = x.shape[0]
    A, At = num_actions, num_atoms

    bt = B if B <= batch_tile else batch_tile
    Bp = pl.cdiv(B, bt) * bt
    if Bp != B:
        x = jnp.pad(x, ((0, Bp - B), (0, 0)))

    dims = (num_inputs, num_nodes, num_actions, num_atoms)
    kernel = functools.partial(rainbow_kernel, dims, offsets)

    out = pl.pallas_call(
        kernel,
        out_shape=jax.ShapeDtypeStruct((Bp, A * At), jnp.float32),
        grid=(Bp // bt,),
        in_specs=[
            pl.BlockSpec((bt, num_inputs), lambda i: (i, 0)),        # batch-tiled input
            pl.BlockSpec(slab.shape,       lambda i: (0, 0)),        # weights resident
        ],
        out_specs=pl.BlockSpec((bt, A * At), lambda i: (i, 0)),
        compiler_params=pltpu.CompilerParams(
            dimension_semantics=("parallel",)),                      # v7x: shard batch over 2 TCs
    )(x, slab)

    return out[:B].reshape(B, A, At)


def _uniform(key, shape, fan_in):
    bound = 1.0 / jnp.sqrt(jnp.float32(fan_in))
    return jax.random.uniform(key, shape, jnp.float32, -bound, bound)


def init_params(key, num_inputs, num_actions, num_atoms, num_nodes=16):
    """Effective (noise-folded) weights stored as (in, out); biases as (1, out)."""
    ks = jax.random.split(key, 12)
    p = dict(
        w1=_uniform(ks[0], (num_inputs, num_nodes), num_inputs),
        b1=_uniform(ks[1], (1, num_nodes), num_inputs),
        w2=_uniform(ks[2], (num_nodes, num_nodes), num_nodes),
        b2=_uniform(ks[3], (1, num_nodes), num_nodes),
        wv1=_uniform(ks[4], (num_nodes, num_nodes), num_nodes),
        bv1=_uniform(ks[5], (1, num_nodes), num_nodes),
        wv2=_uniform(ks[6], (num_nodes, num_atoms), num_nodes),
        bv2=_uniform(ks[7], (1, num_atoms), num_nodes),
        wa1=_uniform(ks[8], (num_nodes, num_nodes), num_nodes),
        ba1=_uniform(ks[9], (1, num_nodes), num_nodes),
        wa2=_uniform(ks[10], (num_nodes, num_actions * num_atoms), num_nodes),
        ba2=_uniform(ks[11], (1, num_actions * num_atoms), num_nodes),
    )
    return p


def fuse_and_pack(p, *, num_nodes, num_actions, num_atoms):
    """Fuse value/advantage streams and pack everything into one (8,128)-aligned slab."""
    N, A, At = num_nodes, num_actions, num_atoms

    wva1 = jnp.concatenate([p["wv1"], p["wa1"]], axis=1)             # (N, 2N)
    bva1 = jnp.concatenate([p["bv1"], p["ba1"]], axis=1)             # (1, 2N)

    wva2 = jnp.zeros((2 * N, At + A * At), jnp.float32)              # block-diagonal head
    wva2 = wva2.at[:N, :At].set(p["wv2"])
    wva2 = wva2.at[N:, At:].set(p["wa2"])
    bva2 = jnp.concatenate([p["bv2"], p["ba2"]], axis=1)             # (1, At + A*At)

    pieces = [p["w1"], p["b1"], p["w2"], p["b2"], wva1, bva1, wva2, bva2]

    max_cols = max(a.shape[1] for a in pieces)
    lanes = max(128, -(-max_cols // 128) * 128)

    padded, offsets, row = [], [], 0
    for a in pieces:
        r, c = a.shape
        rp = -(-r // 8) * 8                                          # sublane-align rows
        padded.append(jnp.pad(a.astype(jnp.float32), ((0, rp - r), (0, lanes - c))))
        offsets.append(row)
        row += rp
    slab = jnp.concatenate(padded, axis=0)                           # (row, lanes)
    return slab, tuple(offsets)


def reference_forward(x, p, *, num_actions, num_atoms):
    """Pure-JAX reference mirroring the PyTorch forward (unfused params)."""
    B = x.shape[0]
    h = jax.nn.relu(x @ p["w1"] + p["b1"])
    h = jax.nn.relu(h @ p["w2"] + p["b2"])
    v = jax.nn.relu(h @ p["wv1"] + p["bv1"]) @ p["wv2"] + p["bv2"]          # (B, At)
    adv = jax.nn.relu(h @ p["wa1"] + p["ba1"]) @ p["wa2"] + p["ba2"]        # (B, A*At)
    v = v.reshape(B, 1, num_atoms)
    adv = adv.reshape(B, num_actions, num_atoms)
    q = v + adv - adv.mean(axis=1, keepdims=True)
    prob = jax.nn.softmax(q.reshape(-1, num_atoms), axis=-1)
    return prob.reshape(B, num_actions, num_atoms)


if __name__ == "__main__":
    batch = 2
    num_inputs = 8
    num_actions = 4
    num_atoms = 8
    num_nodes = 16
    Vmin, Vmax = -10.0, 10.0   # only used by act(); not part of forward

    key = jax.random.PRNGKey(0)
    kx, kp = jax.random.split(key)
    x = jax.random.normal(kx, (batch, num_inputs), jnp.float32)

    params = init_params(kp, num_inputs, num_actions, num_atoms, num_nodes)
    slab, offsets = fuse_and_pack(params, num_nodes=num_nodes,
                                  num_actions=num_actions, num_atoms=num_atoms)

    out = rainbow_forward(x, slab, offsets,
                          num_inputs=num_inputs, num_nodes=num_nodes,
                          num_actions=num_actions, num_atoms=num_atoms)
    out = jax.block_until_ready(out)

    ref = reference_forward(x, params, num_actions=num_actions, num_atoms=num_atoms)

    assert out.shape == (batch, num_actions, num_atoms)
    assert jnp.allclose(out, ref, atol=1e-4, rtol=1e-4), "Pallas output mismatch vs reference"
    assert jnp.allclose(out.sum(-1), jnp.ones((batch, num_actions)), atol=1e-4)

    print("KERNEL_OK")
</pallas_src>

<mosaic_0001>
module attributes {stable_mosaic.version = 11 : i64} {
  func.func @rainbow_kernel(%arg0: i32, %arg1: memref<2x8xf32, #tpu.memory_space<vmem>>, %arg2: memref<104x128xf32, #tpu.memory_space<vmem>>, %arg3: memref<2x32xf32, #tpu.memory_space<vmem>>) attributes {dimension_semantics = [#tpu.dimension_semantics<parallel>], iteration_bounds = array<i64: 1>, scalar_prefetch = 0 : i64, scratch_operands = 0 : i64, tpu.core_type = #tpu.core_type<tc>, window_params = [{transform_indices = @transform_0, window_bounds = array<i64: 2, 8>}, {pipeline_mode = #tpu.pipeline_mode<synchronous>, transform_indices = @transform_1, window_bounds = array<i64: 104, 128>}, {transform_indices = @transform_2, window_bounds = array<i64: 2, 32>}]} {
    %c0 = arith.constant 0 : index
    %c0_0 = arith.constant 0 : index
    %0 = vector.load %arg1[%c0, %c0_0] : memref<2x8xf32, #tpu.memory_space<vmem>>, vector<2x8xf32>
    %c0_1 = arith.constant 0 : index
    %c0_2 = arith.constant 0 : index
    %1 = vector.load %arg2[%c0_1, %c0_2] : memref<104x128xf32, #tpu.memory_space<vmem>>, vector<8x16xf32>
    %c8 = arith.constant 8 : index
    %c0_3 = arith.constant 0 : index
    %2 = vector.load %arg2[%c8, %c0_3] : memref<104x128xf32, #tpu.memory_space<vmem>>, vector<1x16xf32>
    %c16 = arith.constant 16 : index
    %c0_4 = arith.constant 0 : index
    %3 = vector.load %arg2[%c16, %c0_4] : memref<104x128xf32, #tpu.memory_space<vmem>>, vector<16x16xf32>
    %c32 = arith.constant 32 : index
    %c0_5 = arith.constant 0 : index
    %4 = vector.load %arg2[%c32, %c0_5] : memref<104x128xf32, #tpu.memory_space<vmem>>, vector<1x16xf32>
    %c40 = arith.constant 40 : index
    %c0_6 = arith.constant 0 : index
    %5 = vector.load %arg2[%c40, %c0_6] : memref<104x128xf32, #tpu.memory_space<vmem>>, vector<16x32xf32>
    %c56 = arith.constant 56 : index
    %c0_7 = arith.constant 0 : index
    %6 = vector.load %arg2[%c56, %c0_7] : memref<104x128xf32, #tpu.memory_space<vmem>>, vector<1x32xf32>
    %c64 = arith.constant 64 : index
    %c0_8 = arith.constant 0 : index
    %7 = vector.load %arg2[%c64, %c0_8] : memref<104x128xf32, #tpu.memory_space<vmem>>, vector<32x40xf32>
    %c96 = arith.constant 96 : index
    %c0_9 = arith.constant 0 : index
    %8 = vector.load %arg2[%c96, %c0_9] : memref<104x128xf32, #tpu.memory_space<vmem>>, vector<1x40xf32>
    %cst = arith.constant dense<0.000000e+00> : vector<2x16xf32>
    %9 = tpu.matmul %0, %1, %cst {dimension_numbers = #tpu.dot_dimension_numbers<[1], [0], [0], [1], [0, 0, 1, 1], [], []>} : vector<2x8xf32>, vector<8x16xf32>, vector<2x16xf32> -> vector<2x16xf32>
    %10 = vector.broadcast %2 : vector<1x16xf32> to vector<2x16xf32>
    %11 = arith.addf %9, %10 : vector<2x16xf32>
    %cst_10 = arith.constant 0.000000e+00 : f32
    %12 = vector.broadcast %cst_10 : f32 to vector<2x16xf32>
    %13 = arith.maximumf %11, %12 : vector<2x16xf32>
    %cst_11 = arith.constant dense<0.000000e+00> : vector<2x16xf32>
    %14 = tpu.matmul %13, %3, %cst_11 {dimension_numbers = #tpu.dot_dimension_numbers<[1], [0], [0], [1], [0, 0, 1, 1], [], []>} : vector<2x16xf32>, vector<16x16xf32>, vector<2x16xf32> -> vector<2x16xf32>
    %15 = vector.broadcast %4 : vector<1x16xf32> to vector<2x16xf32>
    %16 = arith.addf %14, %15 : vector<2x16xf32>
    %cst_12 = arith.constant 0.000000e+00 : f32
    %17 = vector.broadcast %cst_12 : f32 to vector<2x16xf32>
    %18 = arith.maximumf %16, %17 : vector<2x16xf32>
    %cst_13 = arith.constant dense<0.000000e+00> : vector<2x32xf32>
    %19 = tpu.matmul %18, %5, %cst_13 {dimension_numbers = #tpu.dot_dimension_numbers<[1], [0], [0], [1], [0, 0, 1, 1], [], []>} : vector<2x16xf32>, vector<16x32xf32>, vector<2x32xf32> -> vector<2x32xf32>
    %20 = vector.broadcast %6 : vector<1x32xf32> to vector<2x32xf32>
    %21 = arith.addf %19, %20 : vector<2x32xf32>
    %cst_14 = arith.constant 0.000000e+00 : f32
    %22 = vector.broadcast %cst_14 : f32 to vector<2x32xf32>
    %23 = arith.maximumf %21, %22 : vector<2x32xf32>
    %cst_15 = arith.constant dense<0.000000e+00> : vector<2x40xf32>
    %24 = tpu.matmul %23, %7, %cst_15 {dimension_numbers = #tpu.dot_dimension_numbers<[1], [0], [0], [1], [0, 0, 1, 1], [], []>} : vector<2x32xf32>, vector<32x40xf32>, vector<2x40xf32> -> vector<2x40xf32>
    %25 = vector.broadcast %8 : vector<1x40xf32> to vector<2x40xf32>
    %26 = arith.addf %24, %25 : vector<2x40xf32>
    %27 = vector.extract_strided_slice %26 {offsets = [0, 0], sizes = [2, 8], strides = [1, 1]} : vector<2x40xf32> to vector<2x8xf32>
    %28 = vector.extract_strided_slice %26 {offsets = [0, 8], sizes = [2, 32], strides = [1, 1]} : vector<2x40xf32> to vector<2x32xf32>
    %29 = vector.extract_strided_slice %28 {offsets = [0, 0], sizes = [2, 8], strides = [1, 1]} : vector<2x32xf32> to vector<2x8xf32>
    %30 = vector.extract_strided_slice %28 {offsets = [0, 8], sizes = [2, 8], strides = [1, 1]} : vector<2x32xf32> to vector<2x8xf32>
    %31 = arith.addf %29, %30 : vector<2x8xf32>
    %32 = vector.extract_strided_slice %28 {offsets = [0, 16], sizes = [2, 8], strides = [1, 1]} : vector<2x32xf32> to vector<2x8xf32>
    %33 = arith.addf %31, %32 : vector<2x8xf32>
    %34 = vector.extract_strided_slice %28 {offsets = [0, 24], sizes = [2, 8], strides = [1, 1]} : vector<2x32xf32> to vector<2x8xf32>
    %35 = arith.addf %33, %34 : vector<2x8xf32>
    %cst_16 = arith.constant 2.500000e-01 : f32
    %36 = vector.broadcast %cst_16 : f32 to vector<2x8xf32>
    %37 = arith.mulf %35, %36 : vector<2x8xf32>
    %38 = arith.subf %27, %37 : vector<2x8xf32>
    %39 = vector.extract_strided_slice %28 {offsets = [0, 0], sizes = [2, 8], strides = [1, 1]} : vector<2x32xf32> to vector<2x8xf32>
    %40 = arith.addf %39, %38 : vector<2x8xf32>
    %cst_17 = arith.constant dense<0xFF800000> : vector<2xf32>
    %41 = vector.multi_reduction <maximumf>, %40, %cst_17 [1] : vector<2x8xf32> to vector<2xf32>
    %42 = vector.shape_cast %41 : vector<2xf32> to vector<2x1xf32>
    %43 = vector.broadcast %42 : vector<2x1xf32> to vector<2x8xf32>
    %44 = arith.subf %40, %43 : vector<2x8xf32>
    %45 = math.exp %44 : vector<2x8xf32>
    %cst_18 = arith.constant dense<0.000000e+00> : vector<2xf32>
    %46 = vector.multi_reduction <add>, %45, %cst_18 [1] : vector<2x8xf32> to vector<2xf32>
    %47 = vector.shape_cast %46 : vector<2xf32> to vector<2x1xf32>
    %48 = vector.broadcast %47 : vector<2x1xf32> to vector<2x8xf32>
    %49 = arith.divf %45, %48 : vector<2x8xf32>
    %50 = vector.extract_strided_slice %28 {offsets = [0, 8], sizes = [2, 8], strides = [1, 1]} : vector<2x32xf32> to vector<2x8xf32>
    %51 = arith.addf %50, %38 : vector<2x8xf32>
    %cst_19 = arith.constant dense<0xFF800000> : vector<2xf32>
    %52 = vector.multi_reduction <maximumf>, %51, %cst_19 [1] : vector<2x8xf32> to vector<2xf32>
    %53 = vector.shape_cast %52 : vector<2xf32> to vector<2x1xf32>
    %54 = vector.broadcast %53 : vector<2x1xf32> to vector<2x8xf32>
    %55 = arith.subf %51, %54 : vector<2x8xf32>
    %56 = math.exp %55 : vector<2x8xf32>
    %cst_20 = arith.constant dense<0.000000e+00> : vector<2xf32>
    %57 = vector.multi_reduction <add>, %56, %cst_20 [1] : vector<2x8xf32> to vector<2xf32>
    %58 = vector.shape_cast %57 : vector<2xf32> to vector<2x1xf32>
    %59 = vector.broadcast %58 : vector<2x1xf32> to vector<2x8xf32>
    %60 = arith.divf %56, %59 : vector<2x8xf32>
    %61 = vector.extract_strided_slice %28 {offsets = [0, 16], sizes = [2, 8], strides = [1, 1]} : vector<2x32xf32> to vector<2x8xf32>
    %62 = arith.addf %61, %38 : vector<2x8xf32>
    %cst_21 = arith.constant dense<0xFF800000> : vector<2xf32>
    %63 = vector.multi_reduction <maximumf>, %62, %cst_21 [1] : vector<2x8xf32> to vector<2xf32>
    %64 = vector.shape_cast %63 : vector<2xf32> to vector<2x1xf32>
    %65 = vector.broadcast %64 : vector<2x1xf32> to vector<2x8xf32>
    %66 = arith.subf %62, %65 : vector<2x8xf32>
    %67 = math.exp %66 : vector<2x8xf32>
    %cst_22 = arith.constant dense<0.000000e+00> : vector<2xf32>
    %68 = vector.multi_reduction <add>, %67, %cst_22 [1] : vector<2x8xf32> to vector<2xf32>
    %69 = vector.shape_cast %68 : vector<2xf32> to vector<2x1xf32>
    %70 = vector.broadcast %69 : vector<2x1xf32> to vector<2x8xf32>
    %71 = arith.divf %67, %70 : vector<2x8xf32>
    %72 = vector.extract_strided_slice %28 {offsets = [0, 24], sizes = [2, 8], strides = [1, 1]} : vector<2x32xf32> to vector<2x8xf32>
    %73 = arith.addf %72, %38 : vector<2x8xf32>
    %cst_23 = arith.constant dense<0xFF800000> : vector<2xf32>
    %74 = vector.multi_reduction <maximumf>, %73, %cst_23 [1] : vector<2x8xf32> to vector<2xf32>
    %75 = vector.shape_cast %74 : vector<2xf32> to vector<2x1xf32>
    %76 = vector.broadcast %75 : vector<2x1xf32> to vector<2x8xf32>
    %77 = arith.subf %73, %76 : vector<2x8xf32>
    %78 = math.exp %77 : vector<2x8xf32>
    %cst_24 = arith.constant dense<0.000000e+00> : vector<2xf32>
    %79 = vector.multi_reduction <add>, %78, %cst_24 [1] : vector<2x8xf32> to vector<2xf32>
    %80 = vector.shape_cast %79 : vector<2xf32> to vector<2x1xf32>
    %81 = vector.broadcast %80 : vector<2x1xf32> to vector<2x8xf32>
    %82 = arith.divf %78, %81 : vector<2x8xf32>
    %83 = tpu.concatenate %49, %60, %71, %82 in 1 : vector<2x8xf32>, vector<2x8xf32>, vector<2x8xf32>, vector<2x8xf32> -> vector<2x32xf32>
    %c0_25 = arith.constant 0 : index
    %c0_26 = arith.constant 0 : index
    %84 = vector.load %arg3[%c0_25, %c0_26] : memref<2x32xf32, #tpu.memory_space<vmem>>, vector<2x32xf32>
    tpu.vector_store %arg3[%c0_25, %c0_26], %83 {strides = array<i32>} : memref<2x32xf32, #tpu.memory_space<vmem>>, vector<2x32xf32>,
    return
  }
  func.func @transform_0(%arg0: i32) -> (i32, i32) {
    %c0_i32 = arith.constant 0 : i32
    %c0_i32_0 = arith.constant 0 : i32
    return %arg0, %c0_i32 : i32, i32
  }
  func.func @transform_1(%arg0: i32) -> (i32, i32) {
    %c0_i32 = arith.constant 0 : i32
    %c0_i32_0 = arith.constant 0 : i32
    %c0_i32_1 = arith.constant 0 : i32
    return %c0_i32, %c0_i32_0 : i32, i32
  }
  func.func @transform_2(%arg0: i32) -> (i32, i32) {
    %c0_i32 = arith.constant 0 : i32
    %c0_i32_0 = arith.constant 0 : i32
    return %arg0, %c0_i32 : i32, i32
  }
}

</mosaic_0001>

<bundles_post_ra>
// kernel: tpu_custom_call.1
= control target key start
LH: loop header
LB: loop body
LE: loop exit
PB: predicated region body
PF: predicated region fallthrough
CT: control target
= control target key end

     0   :  { %7 = vsyncpa [#allocation3], 0  ;;  %s712_s0 = inlined_call_operand.hbm [shape: f32[2,8], index: 0, kind: input, shape index: {}]   ;;  %s713_s1 = inlined_call_operand.hbm [shape: f32[104,128], index: 1, kind: input, shape index: {}]   ;;  %s714_s2 = inlined_call_operand.hbm [shape: f32[2,32], index: 2, kind: output, shape index: {}]  }
   0x1   :  { %8 = vsyncpa [#allocation6], 0 }
   0x2   :  { %9 = vsyncpa [#allocation4], 0  ;;  %s652_s9 = smov [#allocation2]   ;;  %s653_s11 = smov [#allocation5]  }
   0x3   :  { %s16_s10 = sshll.u32 %s652_s9, 4  ;;  %s25_s12 = sshll.u32 %s653_s11, 4  ;;  %s17_s10 = int_to_ptr.vmem [resolvable:$true] %s16_s10  ;;  %s26_s12 = int_to_ptr.vmem [resolvable:$true] %s25_s12 }
   0x4   :  { %s594_s13 = scalar_lea.vmem %s17_s10, 32  ;;  %p599_p1 = scmp.lt.s32.totalorder %s17_s10, %s17_s10 }
   0x5   :  { %p595_p0 = scmp.ne.s32.totalorder %s17_s10, %s594_s13  ;;  %p600_p2 = scmp.lt.s32.totalorder %s594_s13, %s594_s13 }
   0x7   :  { %p601_p3 = por %p600_p2, %p599_p1 }
   0x9   :  { %p602_p4 = pnand %p601_p3, %p595_p0 }
   0xb   :  { %605 = shalt.err (!%p602_p4)
}
   0xc   :  { %19 = dma.hbm_to_vmem [thread:$0]  %s712_s0, 32, %s17_s10, [#allocation3]  }
   0xd   :  { %s614_s16 = scalar_lea.vmem %s26_s12, 1664  ;;  %p619_p6 = scmp.lt.s32.totalorder %s26_s12, %s26_s12 }
   0xe   :  { %p615_p5 = scmp.ne.s32.totalorder %s26_s12, %s614_s16  ;;  %p620_p7 = scmp.lt.s32.totalorder %s614_s16, %s614_s16 }
  0x10   :  { %p621_p8 = por %p620_p7, %p619_p6 }
  0x12   :  { %p622_p9 = pnand %p621_p8, %p615_p5 }
  0x14   :  { %625 = shalt.err (!%p622_p9)
}
  0x15   :  { %s654_s17 = smov 128   ;;  %s655_s18 = smov 8  }
  0x16   :  { %31 = dma.hbm_to_vmem [thread:$0]  %s713_s1, 1664, %s26_s12, [#allocation6], %s654_s17, %s654_s17, %s655_s18  }
  0x17   :  { %646 = dma.done.wait [#allocation3], 32  }
  0x18   :  { %647 = vsyncadd [#allocation3], 4294967264 }
  0x19   :  { %648 = dma.done.wait [#allocation6], 1664  }
  0x1a   :  { %649 = vsyncadd [#allocation6], 4294965632  ;;  %v656_v0 = vmov 0.0   ;;  %vm657_vm0 = vmmov 0   ;;  %vm56_vm1 = vcmask 64512   ;;  %v39_v1 = vld [vmem:[#allocation5] sm:$0xff] }
  0x1b   :  { %526 = vmatprep.subr.mxu0 %v656_v0  ;;  %528 = vmatprep.mubr.msk.f32.mxu0 %vm657_vm0, %v656_v0  ;;  %v38_v2 = vld [vmem:[#allocation2] sm:$0x3]  ;;  %v41_v4 = vld [vmem:[#allocation5 + $0x10] sm:$0xff]  ;;  %v505_v5 = vld [vmem:[#allocation5 + $0x8] ss:$0 sm:$0xff]  ;;  %vm135_vm2 = vcmask 130048  }
  0x1c   :  { %545 = vmatprep.subr.mxu1 %v656_v0  ;;  %553 = vmatprep.mubr.msk.f32.mxu1 %vm657_vm0, %v656_v0  ;;  %v42_v3 = vld [vmem:[#allocation5 + $0x18] sm:$0xff]  ;;  %v45_v10 = vld [vmem:[#allocation5 + $0x30] sm:$0xff]  ;;  %v44_v11 = vld [vmem:[#allocation5 + $0x28] sm:$0xff]  ;;  %vm292_vm3 = vcmask 261120   ;;  %s658_s0 = smov 104   ;;  %s659_s1 = smov 120  }
  0x1d   :  { %527 = vmatpush3.msra.mxu0 %v39_v1  ;;  %v50_v12 = vld [vmem:[#allocation5 + $0x58] sm:$0xff]  ;;  %v507_v13 = vld [vmem:[#allocation5 + $0x20] ss:$0 sm:$0xff]  ;;  %v49_v18 = vld [vmem:[#allocation5 + $0x50] sm:$0xff]  ;;  %s660_s21 = smov 112   ;;  %s661_s22 = smov 16  }
  0x1e   :  { %529 = vmatmul.mubr.msk.f32.vlgmr.msra.gmra.mxu0 %vm56_vm1, %v38_v2  ;;  %531 = vmatprep.subr.mxu0 %v656_v0  ;;  %v48_v19 = vld [vmem:[#allocation5 + $0x48] sm:$0xff]  ;;  %v47_v20 = vld [vmem:[#allocation5 + $0x40] sm:$0xff]  ;;  %v509_v21 = vld [vmem:[#allocation5 + $0x38] ss:$0 sm:$0xff]  ;;  %s662_s23 = smov 32   ;;  %s663_s24 = smov 24  }
  0x1f   :  { %535 = vmatprep.mubr.msk.f32.mxu0 %vm657_vm0, %v656_v0  ;;  %532 = vmatpush3.msra.mxu0 %v42_v3  ;;  %v511_v26 = vld [vmem:[#allocation5 + $0x60] ss:$0 sm:$0xff]  ;;  %vm411_vm4 = vcmask 189568   ;;  %vm390_vm5 = vcmask 123968   ;;  %vm431_vm6 = vcmask 255168   ;;  %vm451_vm7 = vcmask 320768  }
  0x20   :  { %533 = vmatprep.subr.mxu0 %v656_v0  ;;  %546 = vmatpush3.msra.mxu1 %v50_v12  ;;  %s664_s25 = smov 96   ;;  %vm401_vm8 = vcmask 58368   ;;  %s665_s26 = smov [#allocation7]   ;;  %vm485_vm9 = vcmask 195584   ;;  %vm487_vm10 = vcmask 254976  }
  0x21   :  { %534 = vmatpush3.msra.mxu0 %v41_v4  ;;  %547 = vmatprep.subr.mxu1 %v656_v0  ;;  %s495_s27 = sshll.u32 %s665_s26, 4  ;;  %s496_s27 = int_to_ptr.vmem [resolvable:$true] %s495_s27 }
  0x22   :  { %538 = vmatprep.subr.mxu0 %v656_v0  ;;  %548 = vmatpush3.msra.mxu1 %v49_v18  ;;  %s626_s28 = scalar_lea.vmem %s496_s27, 32  ;;  %p631_p11 = scmp.lt.s32.totalorder %s496_s27, %s496_s27 }
  0x23   :  { %549 = vmatprep.subr.mxu1 %v656_v0  ;;  %p627_p10 = scmp.ne.s32.totalorder %s496_s27, %s626_s28  ;;  %p632_p12 = scmp.lt.s32.totalorder %s626_s28, %s626_s28 }
  0x24   :  { %550 = vmatpush3.msra.mxu1 %v48_v19 }
  0x25   :  { %551 = vmatprep.subr.mxu1 %v656_v0  ;;  %p633_p13 = por %p632_p12, %p631_p11 }
  0x26   :  { %552 = vmatpush3.msra.mxu1 %v47_v20 }
  0x27   :  { %p634_p0 = pnand %p633_p13, %p627_p10 }
  0xde   :  { %v126_v6 = vpop.f32.mrf.mxu0 }
  0xdf   :  { %v127_v7 = vadd.f32 %v505_v5, %v126_v6 }
  0xe0   :  { %v530_v8 = vpop.f32.mrf.mxu0 }
  0xe1   :  { %v130_v9 = vmax.f32 %v127_v7, 0.0 }
  0xe3   :  { %536 = vmatmul.mubr.msk.f32.vlgmr.msra.gmra.mxu0 %vm135_vm2, %v130_v9 }
  0xe4   :  { %542 = vmatprep.mubr.msk.f32.mxu0 %vm657_vm0, %v656_v0  ;;  %539 = vmatpush3.msra.mxu0 %v45_v10 }
  0xe5   :  { %540 = vmatprep.subr.mxu0 %v656_v0 }
  0xe6   :  { %541 = vmatpush3.msra.mxu0 %v44_v11 }
 0x1a3   :  { %v205_v14 = vpop.f32.mrf.mxu0 }
 0x1a4   :  { %v206_v15 = vadd.f32 %v507_v13, %v205_v14 }
 0x1a5   :  { %v537_v16 = vpop.f32.mrf.mxu0 }
 0x1a6   :  { %v209_v17 = vmax.f32 %v206_v15, 0.0 }
 0x1a8   :  { %543 = vmatmul.mubr.msk.f32.vlgmr.msra.gmra.mxu0 %vm135_vm2, %v209_v17 }
 0x268   :  { %v283_v22 = vpop.f32.mrf.mxu0 }
 0x269   :  { %v284_v23 = vadd.f32 %v509_v21, %v283_v22 }
 0x26a   :  { %v544_v24 = vpop.f32.mrf.mxu0 }
 0x26b   :  { %v287_v25 = vmax.f32 %v284_v23, 0.0 }
 0x26d   :  { %554 = vmatmul.mubr.msk.f32.vlgmr.msra.gmra.mxu1 %vm292_vm3, %v287_v25 }
 0x32d   :  { %v362_v27 = vpop.f32.mrf.mxu1 }
 0x32e   :  { %v363_v28 = vadd.f32 %v511_v26, %v362_v27 }
 0x32f   :  { %v555_v29 = vpop.f32.mrf.mxu1 }
 0x330   :  { %375 = vrot.lane.b32.xlu1 %v363_v28, %s658_s0  ;;  %367 = vrot.lane.b32.xlu0 %v363_v28, %s659_s1 }
 0x334   :  { %371 = vrot.lane.b32.xlu0 %v363_v28, %s660_s21 }
 0x3a2   :  { %v368_v30 = vpop.permute.xlu0 %367  ;;  %v376_v34 = vpop.permute.xlu1 %375 }
 0x3a3   :  { %v370_v31 = vadd.f32 %v368_v30, %v363_v28 }
 0x3a6   :  { %v372_v32 = vpop.permute.xlu0 %371 }
 0x3a7   :  { %v374_v33 = vadd.f32 %v372_v32, %v370_v31 }
 0x3a9   :  { %v378_v35 = vadd.f32 %v376_v34, %v374_v33 }
 0x3ab   :  { %v379_v36 = vmul.f32 0.25, %v378_v35 }
 0x3ad   :  { %381 = vrot.lane.b32.xlu1 %v379_v36, %s659_s1 }
 0x41f   :  { %v382_v37 = vpop.permute.xlu1 %381 }
 0x420   :  { %v384_v38 = vsub.f32 %v363_v28, %v382_v37 }
 0x422   :  { %407 = vrot.lane.b32.xlu1 %v384_v38, %s661_s22  ;;  %386 = vrot.lane.b32.xlu0 %v384_v38, %s655_s18 }
 0x426   :  { %447 = vrot.lane.b32.xlu1 %v384_v38, %s662_s23  ;;  %427 = vrot.lane.b32.xlu0 %v384_v38, %s663_s24 }
 0x494   :  { %v408_v39 = vpop.permute.xlu1 %407  ;;  %v387_v40 = vpop.permute.xlu0 %386 }
 0x495   :  { %v410_v41 = vadd.f32 %v408_v39, %v363_v28  ;;  %v389_v42 = vadd.f32 %v387_v40, %v363_v28 }
 0x497   :  { %v412_v43 = vsel %vm411_vm4, %v410_v41, -inf  ;;  %v391_v44 = vsel %vm390_vm5, %v389_v42, -inf }
 0x498   :  { %413 = vmax.xlane.f32.xlu1 %v412_v43  ;;  %v448_v45 = vpop.permute.xlu1 %447  ;;  %392 = vmax.xlane.f32.xlu0 %v391_v44  ;;  %v428_v46 = vpop.permute.xlu0 %427 }
 0x499   :  { %v430_v47 = vadd.f32 %v428_v46, %v363_v28  ;;  %v450_v48 = vadd.f32 %v448_v45, %v363_v28 }
 0x49b   :  { %v432_v49 = vsel %vm431_vm6, %v430_v47, -inf  ;;  %v452_v50 = vsel %vm451_vm7, %v450_v48, -inf }
 0x49c   :  { %433 = vmax.xlane.f32.xlu0 %v432_v49 }
 0x4a0   :  { %453 = vmax.xlane.f32.xlu0 %v452_v50 }
 0x521   :  { %v414_v51 = vpop.xlane.xlu1 %413  ;;  %v393_v52 = vpop.xlane.xlu0 %392 }
 0x522   :  { %v415_v53 = vsub.f32 %v410_v41, %v414_v51  ;;  %v394_v54 = vsub.f32 %v389_v42, %v393_v52 }
 0x524   :  { %v416_v55 = vmul.f32 1.442695, %v415_v53  ;;  %v395_v56 = vmul.f32 1.442695, %v394_v54 }
 0x525   :  { %v434_v57 = vpop.xlane.xlu0 %433 }
 0x526   :  { %570 = vpow2.f32 %v416_v55  ;;  %v435_v58 = vsub.f32 %v430_v47, %v434_v57 }
 0x527   :  { %572 = vpow2.f32 %v395_v56 }
 0x528   :  { %v436_v59 = vmul.f32 1.442695, %v435_v58 }
 0x529   :  { %v454_v60 = vpop.xlane.xlu0 %453 }
 0x52a   :  { %574 = vpow2.f32 %v436_v59  ;;  %v455_v61 = vsub.f32 %v450_v48, %v454_v60 }
 0x52c   :  { %v456_v62 = vmul.f32 1.442695, %v455_v61 }
 0x52e   :  { %576 = vpow2.f32 %v456_v62 }
 0x533   :  { %v571_v63 = vpop.eup %570 }
 0x534   :  { %v573_v0 = vpop.eup %572  ;;  %419 = vrot.lane.b32.xlu0 %v571_v63, %s660_s21 }
 0x535   :  { %398 = vrot.lane.b32.xlu1 %v573_v0, %s659_s1 }
 0x537   :  { %v575_v1 = vpop.eup %574 }
 0x539   :  { %439 = vrot.lane.b32.xlu1 %v575_v1, %s658_s0 }
 0x53b   :  { %v577_v2 = vpop.eup %576 }
 0x53d   :  { %459 = vrot.lane.b32.xlu1 %v577_v2, %s664_s25 }
 0x5a6   :  { %v420_v3 = vpop.permute.xlu0 %419 }
 0x5a7   :  { %v399_v4 = vpop.permute.xlu1 %398  ;;  %v422_v5 = vsel %vm401_vm8, %v420_v3, 0.0 }
 0x5a8   :  { %v402_v6 = vsel %vm401_vm8, %v399_v4, 0.0  ;;  %423 = vadd.xlane.f32.xlu1 %v422_v5 }
 0x5a9   :  { %403 = vadd.xlane.f32.xlu0 %v402_v6 }
 0x5ab   :  { %v440_v7 = vpop.permute.xlu1 %439 }
 0x5ac   :  { %v442_v8 = vsel %vm401_vm8, %v440_v7, 0.0 }
 0x5ad   :  { %443 = vadd.xlane.f32.xlu0 %v442_v8 }
 0x5af   :  { %v460_v9 = vpop.permute.xlu1 %459 }
 0x5b0   :  { %v462_v10 = vsel %vm401_vm8, %v460_v9, 0.0 }
 0x5b1   :  { %463 = vadd.xlane.f32.xlu0 %v462_v10 }
 0x631   :  { %v424_v11 = vpop.xlane.xlu1 %423 }
 0x632   :  { %578 = vrcp.f32 %v424_v11  ;;  %v404_v12 = vpop.xlane.xlu0 %403 }
 0x633   :  { %580 = vrcp.f32 %v404_v12 }
 0x636   :  { %v444_v13 = vpop.xlane.xlu0 %443 }
 0x637   :  { %582 = vrcp.f32 %v444_v13 }
 0x63a   :  { %v464_v14 = vpop.xlane.xlu0 %463 }
 0x63b   :  { %584 = vrcp.f32 %v464_v14 }
 0x63f   :  { %v579_v15 = vpop.eup %578 }
 0x640   :  { %v581_v16 = vpop.eup %580  ;;  %v426_v17 = vmul.f32 %v579_v15, %v571_v63 }
 0x641   :  { %v406_v18 = vmul.f32 %v581_v16, %v573_v0 }
 0x642   :  { %472 = vrot.lane.b32.xlu0 %v426_v17, %s659_s1 }
 0x643   :  { %468 = vrot.lane.b32.xlu1 %v406_v18, %s659_s1 }
 0x644   :  { %v583_v19 = vpop.eup %582 }
 0x645   :  { %v446_v20 = vmul.f32 %v583_v19, %v575_v1 }
 0x647   :  { %476 = vrot.lane.b32.xlu1 %v446_v20, %s659_s1 }
 0x648   :  { %v585_v21 = vpop.eup %584 }
 0x649   :  { %v466_v22 = vmul.f32 %v585_v21, %v577_v2 }
 0x64b   :  { %480 = vrot.lane.b32.xlu1 %v466_v22, %s659_s1 }
 0x6b4   :  { %v473_v24 = vpop.permute.xlu0 %472 }
 0x6b5   :  { %v469_v23 = vpop.permute.xlu1 %468 }
 0x6b6   :  { %v483_v26 = vsel %vm56_vm1, %v469_v23, %v473_v24 }
 0x6b9   :  { %v477_v25 = vpop.permute.xlu1 %476 }
 0x6ba   :  { %v484_v27 = vsel %vm135_vm2, %v483_v26, %v477_v25 }
 0x6bd   :  { %v481_v28 = vpop.permute.xlu1 %480 }
 0x6be   :  { %v486_v29 = vsel %vm485_vm9, %v484_v27, %v481_v28 }
 0x6bf   :  { %488 = vst.msk [vmem:[#allocation7] sm:$0x3] %vm487_vm10, %v486_v29 }
 0x6c0   :  { %637 = shalt.err (!%p634_p0)
}
 0x6c1   :  { %498 = dma.vmem_to_hbm [thread:$0]  %s496_s27, 32, %s714_s2, [#allocation4]  }
 0x6c2   :  { %650 = dma.done.wait [#allocation4], 32  }
 0x6c3   :  { %651 = vsyncadd [#allocation4], 4294967264 }
 0x6c4   :  { %502 = vsyncpa [#allocation3], 1 }
 0x6c5   :  { %503 = vsyncpa [#allocation6], 1 }
 0x6c6   :  { %504 = vsyncpa [#allocation4], 1 }

</bundles_post_ra>
